<compile_context>
chip_gen: v6e
topology: v6e:2x2x1
jax: 0.10.0
libtpu: 0.0.40
codegen_flags: <defaults>
</compile_context>

<pallas_src>
import functools

import jax
import jax.numpy as jnp
from jax.experimental import pallas as pl
from jax.experimental.pallas import tpu as pltpu


# ----------------------------------------------------------------------------
# Parameter construction (init-time glue, plain JAX)
# ----------------------------------------------------------------------------
def _solve_homography(pts_src, pts_dst):
    """4-point DLT: H such that H @ [x_s, y_s, 1] ~ [x_d, y_d, 1]."""
    rows = []
    rhs = []
    for (xs, ys), (xd, yd) in zip(pts_src, pts_dst):
        rows.append([xs, ys, 1.0, 0.0, 0.0, 0.0, -xs * xd, -ys * xd])
        rhs.append(xd)
        rows.append([0.0, 0.0, 0.0, xs, ys, 1.0, -xs * yd, -ys * yd])
        rhs.append(yd)
    A = jnp.asarray(rows, jnp.float32)
    b = jnp.asarray(rhs, jnp.float32)
    h = jnp.linalg.solve(A, b)
    return jnp.concatenate([h, jnp.ones((1,), jnp.float32)]).reshape(3, 3)


def get_rand_homography_mat(key, image_size, rho, batch_size):
    """Per batch: a random perspective transform (corners jittered by +-rho)
    and its inverse.  Returns (B, 2, 3, 3): slot 1 = forward, slot 0 = inverse."""
    S = float(image_size)
    corners = [(0.0, 0.0), (S - 1.0, 0.0), (S - 1.0, S - 1.0), (0.0, S - 1.0)]
    mats = []
    for b in range(batch_size):
        kb = jax.random.fold_in(key, b)
        jitter = jax.random.uniform(kb, (4, 2), minval=-rho, maxval=rho)
        dst = [(cx + float(jitter[i, 0]), cy + float(jitter[i, 1]))
               for i, (cx, cy) in enumerate(corners)]
        H = _solve_homography(corners, dst)
        H_inv = jnp.linalg.inv(H)
        mats.append(jnp.stack([H_inv, H], axis=0))  # [:,0]=inverse, [:,1]=forward
    return jnp.stack(mats, axis=0)  # (B, 2, 3, 3)


def warp_matrix(Hm, Hsz, Wsz):
    """Dense (HW, HW) bilinear inverse-warp matrix for one 3x3 homography.

    dst(x_d, y_d) = src(Hm applied to (x_d, y_d)) with bilinear interpolation
    and zero padding outside the image (tgm.warp_perspective semantics).
    """
    HW = Hsz * Wsz
    yy, xx = jnp.meshgrid(jnp.arange(Hsz, dtype=jnp.float32),
                          jnp.arange(Wsz, dtype=jnp.float32), indexing="ij")
    x = xx.reshape(-1)
    y = yy.reshape(-1)
    denom = Hm[2, 0] * x + Hm[2, 1] * y + Hm[2, 2]
    denom = jnp.where(jnp.abs(denom) < 1e-8, 1e-8, denom)
    xs = (Hm[0, 0] * x + Hm[0, 1] * y + Hm[0, 2]) / denom
    ys = (Hm[1, 0] * x + Hm[1, 1] * y + Hm[1, 2]) / denom

    x0 = jnp.floor(xs)
    y0 = jnp.floor(ys)
    Wm = jnp.zeros((HW, HW), jnp.float32)
    for dy in (0.0, 1.0):
        for dx in (0.0, 1.0):
            xi = x0 + dx
            yi = y0 + dy
            wgt = (1.0 - jnp.abs(xs - xi)) * (1.0 - jnp.abs(ys - yi))
            valid = (xi >= 0) & (xi <= Wsz - 1) & (yi >= 0) & (yi <= Hsz - 1)
            sidx = (jnp.clip(yi, 0, Hsz - 1).astype(jnp.int32) * Wsz
                    + jnp.clip(xi, 0, Wsz - 1).astype(jnp.int32))
            Wm = Wm + (wgt * valid)[:, None] * jax.nn.one_hot(sidx, HW,
                                                              dtype=jnp.float32)
    return Wm  # dst_flat = Wm @ src_flat


# ----------------------------------------------------------------------------
# Pallas kernel: single fused warp matmul (per batch element)
# ----------------------------------------------------------------------------
def lfm_kernel(xn_ref, wt_ref, o_ref):
    # xn_ref: (1, C, HW) f32; wt_ref: (1, HW, HW) bf16; o_ref: (1, C, HW) f32
    xn = xn_ref[0].astype(jnp.bfloat16)                         # (C, HW)
    y = jnp.dot(xn, wt_ref[0], preferred_element_type=jnp.float32)
    o_ref[0] = y.astype(o_ref.dtype)


@jax.jit
def lfm_forward(x_nchw, noise_nchw, wt_comb):
    """out = warp0(warp1(x + noise)) via the precomputed combined operator."""
    B, C, H, W = x_nchw.shape
    HW = H * W
    # Fold the noise add in the wrapper: XLA fuses it with the normal draw,
    # so the Pallas kernel streams only one activation block per grid step.
    xn = (x_nchw + noise_nchw).reshape(B, C, HW)

    out = pl.pallas_call(
        lfm_kernel,
        out_shape=jax.ShapeDtypeStruct((B, C, HW), x_nchw.dtype),
        grid_spec=pltpu.PrefetchScalarGridSpec(
            num_scalar_prefetch=0,
            grid=(B,),
            in_specs=[
                pl.BlockSpec((1, C, HW), lambda b: (b, 0, 0)),
                pl.BlockSpec((1, HW, HW), lambda b: (b, 0, 0)),
            ],
            out_specs=pl.BlockSpec((1, C, HW), lambda b: (b, 0, 0)),
        ),
        compiler_params=pltpu.CompilerParams(
            # Parallel batch axis: shards grid steps across v7x's 2 TCs;
            # no-op on v5e/v6e.
            dimension_semantics=("parallel",),
        ),
    )(xn, wt_comb)
    return out.reshape(B, C, H, W)


# ----------------------------------------------------------------------------
# LFM module analogue
# ----------------------------------------------------------------------------
class LFM:
    def __init__(self, image_size=16, batch_size=2, key=None):
        if key is None:
            key = jax.random.PRNGKey(0)
        k_std, k_hom = jax.random.split(key)
        self.image_size = image_size
        self.batch_size = batch_size
        # std_noise = (torch.rand(1) * 0.05).item() -> deterministic analogue
        self.std_noise = float(jax.random.uniform(k_std, ()) * 0.05)
        # homography: (B, 2, 3, 3)
        self.homography = get_rand_homography_mat(
            k_hom, image_size, image_size * 0.1, batch_size)

        # Precompute the per-batch dense warp operators (fixed parameters) and
        # FOLD the two warps into one combined operator:
        #   out_flat = W0 @ (W1 @ src_flat)  =>  out = xn @ (W1^T @ W0^T)
        HW = image_size * image_size
        wt1, wt0, wt_comb = [], [], []
        for b in range(batch_size):
            W1 = warp_matrix(self.homography[b, 1], image_size, image_size)
            W0 = warp_matrix(self.homography[b, 0], image_size, image_size)
            wt1.append(W1.T)
            wt0.append(W0.T)
            wt_comb.append(W1.T @ W0.T)        # = (W0 @ W1)^T, folded in f32
        # Keep f32 two-step operators around only for the reference check.
        self.wt1 = jnp.stack(wt1, axis=0)                       # (B, HW, HW) f32
        self.wt0 = jnp.stack(wt0, axis=0)                       # (B, HW, HW) f32
        # Hot-path parameter: combined operator in bf16 (MXU-native input).
        self.wt_comb = jnp.stack(wt_comb, axis=0).astype(jnp.bfloat16)

    def __call__(self, x, noise_key):
        noise = jax.random.normal(noise_key, x.shape, x.dtype) * self.std_noise
        return lfm_forward(x, noise, self.wt_comb), noise


# ----------------------------------------------------------------------------
# References for verification
# ----------------------------------------------------------------------------
def lfm_reference_two_step_f32(x, noise, wt1, wt0):
    """Original two-matmul f32 semantics (no folding, no bf16)."""
    B, C, H, W = x.shape
    HW = H * W
    xn = (x + noise).reshape(B, C, HW)
    y1 = jnp.einsum("bcs,bst->bct", xn, wt1)
    y0 = jnp.einsum("bcs,bst->bct", y1, wt0)
    return y0.reshape(B, C, H, W)


def lfm_reference_matched(x, noise, wt_comb):
    """Same math as the kernel (bf16 inputs, f32 accumulation)."""
    B, C, H, W = x.shape
    HW = H * W
    xn = (x + noise).reshape(B, C, HW).astype(jnp.bfloat16)
    y = jnp.einsum("bcs,bst->bct", xn, wt_comb,
                   preferred_element_type=jnp.float32)
    return y.reshape(B, C, H, W).astype(x.dtype)


if __name__ == "__main__":
    B, C, S = 2, 4, 16  # batch, channels, image_size
    key = jax.random.PRNGKey(0)
    k_mod, k_x, k_noise = jax.random.split(key, 3)

    lfm = LFM(image_size=S, batch_size=B, key=k_mod)
    x = jax.random.normal(k_x, (B, C, S, S), jnp.float32)

    out, noise = lfm(x, k_noise)
    out = jax.block_until_ready(out)
    assert out.shape == (B, C, S, S)

    # 1) Tight check vs a reference that mimics the kernel math exactly
    #    (bf16 operands, f32 accumulation).
    ref_m = lfm_reference_matched(x, noise, lfm.wt_comb)
    assert jnp.allclose(out, ref_m, atol=1e-3, rtol=1e-3), \
        "mismatch vs bf16-matched reference"

    # 2) Semantic check vs the original two-warp f32 math (looser tolerance:
    #    bf16 weight/activation quantization + folded rounding order).
    ref_f = lfm_reference_two_step_f32(x, noise, lfm.wt1, lfm.wt0)
    assert jnp.allclose(out, ref_f, atol=5e-2, rtol=5e-2), \
        "mismatch vs two-step f32 reference"

    print("KERNEL_OK")
</pallas_src>

<mosaic_0001>
module attributes {stable_mosaic.version = 11 : i64} {
  func.func @lfm_kernel(%arg0: i32, %arg1: memref<1x4x256xf32, #tpu.memory_space<vmem>>, %arg2: memref<1x256x256xbf16, #tpu.memory_space<vmem>>, %arg3: memref<1x4x256xf32, #tpu.memory_space<vmem>>) attributes {dimension_semantics = [#tpu.dimension_semantics<parallel>], iteration_bounds = array<i64: 2>, scalar_prefetch = 0 : i64, scratch_operands = 0 : i64, tpu.core_type = #tpu.core_type<tc>, window_params = [{transform_indices = @transform_0, window_bounds = array<i64: 1, 4, 256>}, {transform_indices = @transform_1, window_bounds = array<i64: 1, 256, 256>}, {transform_indices = @transform_2, window_bounds = array<i64: 1, 4, 256>}]} {
    %c0 = arith.constant 0 : index
    %c0_0 = arith.constant 0 : index
    %c0_1 = arith.constant 0 : index
    %0 = vector.load %arg1[%c0, %c0_0, %c0_1] : memref<1x4x256xf32, #tpu.memory_space<vmem>>, vector<1x4x256xf32>
    %1 = vector.shape_cast %0 : vector<1x4x256xf32> to vector<4x256xf32>
    %2 = arith.truncf %1 : vector<4x256xf32> to vector<4x256xbf16>
    %c0_2 = arith.constant 0 : index
    %c0_3 = arith.constant 0 : index
    %c0_4 = arith.constant 0 : index
    %3 = vector.load %arg2[%c0_2, %c0_3, %c0_4] : memref<1x256x256xbf16, #tpu.memory_space<vmem>>, vector<1x256x256xbf16>
    %4 = vector.shape_cast %3 : vector<1x256x256xbf16> to vector<256x256xbf16>
    %cst = arith.constant dense<0.000000e+00> : vector<4x256xf32>
    %5 = tpu.matmul %2, %4, %cst {dimension_numbers = #tpu.dot_dimension_numbers<[1], [0], [0], [1], [0, 0, 1, 1], [], []>} : vector<4x256xbf16>, vector<256x256xbf16>, vector<4x256xf32> -> vector<4x256xf32>
    %c0_5 = arith.constant 0 : index
    %c0_6 = arith.constant 0 : index
    %c0_7 = arith.constant 0 : index
    %6 = vector.load %arg3[%c0_5, %c0_6, %c0_7] : memref<1x4x256xf32, #tpu.memory_space<vmem>>, vector<1x4x256xf32>
    %7 = vector.shape_cast %6 : vector<1x4x256xf32> to vector<4x256xf32>
    %8 = vector.shape_cast %5 : vector<4x256xf32> to vector<1x4x256xf32>
    tpu.vector_store %arg3[%c0_5, %c0_6, %c0_7], %8 {strides = array<i32>} : memref<1x4x256xf32, #tpu.memory_space<vmem>>, vector<1x4x256xf32>,
    return
  }
  func.func @transform_0(%arg0: i32) -> (i32, i32, i32) {
    %c0_i32 = arith.constant 0 : i32
    %c0_i32_0 = arith.constant 0 : i32
    %c0_i32_1 = arith.constant 0 : i32
    return %arg0, %c0_i32, %c0_i32_0 : i32, i32, i32
  }
  func.func @transform_1(%arg0: i32) -> (i32, i32, i32) {
    %c0_i32 = arith.constant 0 : i32
    %c0_i32_0 = arith.constant 0 : i32
    %c0_i32_1 = arith.constant 0 : i32
    return %arg0, %c0_i32, %c0_i32_0 : i32, i32, i32
  }
  func.func @transform_2(%arg0: i32) -> (i32, i32, i32) {
    %c0_i32 = arith.constant 0 : i32
    %c0_i32_0 = arith.constant 0 : i32
    %c0_i32_1 = arith.constant 0 : i32
    return %arg0, %c0_i32, %c0_i32_0 : i32, i32, i32
  }
}

</mosaic_0001>

<bundles_post_ra>
// kernel: lfm_forward.1
= control target key start
LH: loop header
LB: loop body
LE: loop exit
PB: predicated region body
PF: predicated region fallthrough
CT: control target
= control target key end

     0   :  { %s603_s9 = smov 0   ;;  %s665_s0 = inlined_call_operand.vmem [shape: f32[2,4,256], index: 0, kind: input, shape index: {}]   ;;  %s666_s1 = inlined_call_operand.vmem [shape: bf16[2,256,256], index: 1, kind: input, shape index: {}]   ;;  %s667_s2 = inlined_call_operand.vmem [shape: f32[2,4,256], index: 2, kind: output, shape index: {}]  }
   0x1 LB: > { %s475_s10 = sadd.s32 4294967295, %s586_s9   ;;  %p479_p0 = scmp.ge.s32.totalorder %s586_s9, 1  ;;  %s586_s9 = sphi %s603_s9, %s12_s9  }
   0x2   : > { %p122_p1 = scmp.lt.s32.totalorder %s586_s9, 3 }
   0x4   : > { %p123_p2 = pnand %p479_p0, %p122_p1 }
   0x5   : > { %p149_p3 = scmp.lt.s32.totalorder (!%p123_p2), %s475_s10, 1 }
   0x6   : > { %126 = sbr.rel (%p123_p2) target bundleno = 278 (0x116), region = 28 }
   0xb   : > { %s669_s10 = smov (!%p149_p3, %s475_s10), 1 }
   0xc   : > { %s521_s11 = sshll.u32 %s669_s10, 8  ;;  %s520_s15 = sshll.u32 %s669_s10, 3 }
   0xd   : > { %s617_s14 = scalar_lea.vmem %s666_s1, %s521_s11  ;;  %s153_s18 = scalar_lea.vmem %s665_s0, %s520_s15 }
   0xe   : > { %v531_v0 = vld [vmem:[%s617_s14 + $0x74] ss:$8 sps:$4 sm:$0xff]   ;;  %v533_v1 = vld [vmem:[%s617_s14 + $0x70] ss:$8 sps:$4 sm:$0xff]   ;;  %v534_v2 = vld [vmem:[%s617_s14 + $0x64] ss:$8 sps:$4 sm:$0xff]   ;;  %s163_s21 = scalar_lea.vmem %s667_s2, %s520_s15 }
   0xf   : > { %362 = vmatprep.subr.bf16.mxu0 %v531_v0  ;;  %v536_v3 = vld [vmem:[%s617_s14 + $0x60] ss:$8 sps:$4 sm:$0xff]   ;;  %v537_v4 = vld [vmem:[%s617_s14 + $0x54] ss:$8 sps:$4 sm:$0xff]   ;;  %v539_v5 = vld [vmem:[%s617_s14 + $0x50] ss:$8 sps:$4 sm:$0xff]  }
  0x10   : > { %363 = vmatpush1.bf16.msra.mxu0 %v533_v1  ;;  %v540_v6 = vld [vmem:[%s617_s14 + $0x44] ss:$8 sps:$4 sm:$0xff]   ;;  %v542_v7 = vld [vmem:[%s617_s14 + $0x40] ss:$8 sps:$4 sm:$0xff]   ;;  %v543_v8 = vld [vmem:[%s617_s14 + $0x34] ss:$8 sps:$4 sm:$0xff]  }
  0x11   : > { %364 = vmatprep.subr.bf16.mxu0 %v534_v2  ;;  %v545_v9 = vld [vmem:[%s617_s14 + $0x30] ss:$8 sps:$4 sm:$0xff]   ;;  %v546_v10 = vld [vmem:[%s617_s14 + $0x24] ss:$8 sps:$4 sm:$0xff]   ;;  %v548_v11 = vld [vmem:[%s617_s14 + $0x20] ss:$8 sps:$4 sm:$0xff]  }
  0x12   : > { %v549_v12 = vld [vmem:[%s617_s14 + $0x14] ss:$8 sps:$4 sm:$0xff]   ;;  %v164_v13 = vld [vmem:[%s153_s18] sm:$0xff]  ;;  %v551_v15 = vld [vmem:[%s617_s14 + $0x10] ss:$8 sps:$4 sm:$0xff]  }
  0x13   : > { %v166_v14 = vcombine.high %v164_v13, %v164_v13  ;;  %v552_v16 = vld [vmem:[%s617_s14 + $0x4] ss:$8 sps:$4 sm:$0xff]   ;;  %v554_v18 = vld [vmem:[%s617_s14] ss:$8 sps:$4 sm:$0xff]   ;;  %v555_v19 = vld [vmem:[%s617_s14 + $0xf4] ss:$8 sps:$4 sm:$0xff]   ;;  %v168_v35 = vpack.c.bf16 %v164_v13, %v164_v13 }
  0x14   : > { %365 = vmatpush1.bf16.msra.mxu0 %v536_v3  ;;  %v557_v20 = vld [vmem:[%s617_s14 + $0xf0] ss:$8 sps:$4 sm:$0xff]   ;;  %v558_v21 = vld [vmem:[%s617_s14 + $0xe4] ss:$8 sps:$4 sm:$0xff]   ;;  %v560_v22 = vld [vmem:[%s617_s14 + $0xe0] ss:$8 sps:$4 sm:$0xff]  }
  0x15   : > { %366 = vmatprep.subr.bf16.mxu0 %v537_v4  ;;  %v169_v17 = vpack.c.bf16 %v166_v14, %v166_v14  ;;  %v561_v23 = vld [vmem:[%s617_s14 + $0xd4] ss:$8 sps:$4 sm:$0xff]   ;;  %v563_v24 = vld [vmem:[%s617_s14 + $0xd0] ss:$8 sps:$4 sm:$0xff]   ;;  %v564_v25 = vld [vmem:[%s617_s14 + $0xc4] ss:$8 sps:$4 sm:$0xff]  }
  0x16   : > { %v566_v26 = vld [vmem:[%s617_s14 + $0xc0] ss:$8 sps:$4 sm:$0xff]   ;;  %v567_v27 = vld [vmem:[%s617_s14 + $0xb4] ss:$8 sps:$4 sm:$0xff]   ;;  %v569_v28 = vld [vmem:[%s617_s14 + $0xb0] ss:$8 sps:$4 sm:$0xff]  }
  0x17   : > { %394 = vmatprep.mubr.bf16.mxu0 %v169_v17  ;;  %v570_v29 = vld [vmem:[%s617_s14 + $0xa4] ss:$8 sps:$4 sm:$0xff]   ;;  %v572_v30 = vld [vmem:[%s617_s14 + $0xa0] ss:$8 sps:$4 sm:$0xff]   ;;  %v573_v31 = vld [vmem:[%s617_s14 + $0x94] ss:$8 sps:$4 sm:$0xff]  }
  0x18   : > { %367 = vmatpush1.bf16.msra.mxu0 %v539_v5  ;;  %v575_v32 = vld [vmem:[%s617_s14 + $0x90] ss:$8 sps:$4 sm:$0xff]   ;;  %v576_v33 = vld [vmem:[%s617_s14 + $0x84] ss:$8 sps:$4 sm:$0xff]   ;;  %v578_v34 = vld [vmem:[%s617_s14 + $0x80] ss:$8 sps:$4 sm:$0xff]  }
  0x19   : > { %368 = vmatprep.subr.bf16.mxu0 %v540_v6 }
  0x1c   : > { %369 = vmatpush1.bf16.msra.mxu0 %v542_v7 }
  0x1d   : > { %370 = vmatprep.subr.bf16.mxu0 %v543_v8 }
  0x20   : > { %371 = vmatpush1.bf16.msra.mxu0 %v545_v9 }
  0x21   : > { %372 = vmatprep.subr.bf16.mxu0 %v546_v10 }
  0x24   : > { %373 = vmatpush1.bf16.msra.mxu0 %v548_v11 }
  0x25   : > { %374 = vmatprep.subr.bf16.mxu0 %v549_v12 }
  0x28   : > { %375 = vmatpush1.bf16.msra.mxu0 %v551_v15 }
  0x29   : > { %376 = vmatprep.subr.bf16.mxu0 %v552_v16 }
  0x2c   : > { %377 = vmatpush1.bf16.msra.mxu0 %v554_v18 }
  0x2d   : > { %378 = vmatprep.subr.bf16.mxu0 %v555_v19 }
  0x30   : > { %379 = vmatpush2.bf16.msra.mxu0 %v557_v20 }
  0x31   : > { %380 = vmatprep.subr.bf16.mxu0 %v558_v21 }
  0x34   : > { %381 = vmatpush2.bf16.msra.mxu0 %v560_v22 }
  0x35   : > { %382 = vmatprep.subr.bf16.mxu0 %v561_v23 }
  0x38   : > { %383 = vmatpush2.bf16.msra.mxu0 %v563_v24 }
  0x39   : > { %384 = vmatprep.subr.bf16.mxu0 %v564_v25 }
  0x3c   : > { %385 = vmatpush2.bf16.msra.mxu0 %v566_v26 }
  0x3d   : > { %386 = vmatprep.subr.bf16.mxu0 %v567_v27 }
  0x40   : > { %387 = vmatpush2.bf16.msra.mxu0 %v569_v28 }
  0x41   : > { %388 = vmatprep.subr.bf16.mxu0 %v570_v29 }
  0x44   : > { %389 = vmatpush2.bf16.msra.mxu0 %v572_v30 }
  0x45   : > { %390 = vmatprep.subr.bf16.mxu0 %v573_v31 }
  0x48   : > { %391 = vmatpush2.bf16.msra.mxu0 %v575_v32 }
  0x49   : > { %392 = vmatprep.subr.bf16.mxu0 %v576_v33 }
  0x4c   : > { %393 = vmatpush2.bf16.msra.mxu0 %v578_v34 }
  0x4f   : > { %395 = vmatmul.mubr.bf16.vlgmr.msra.gmra.mxu0 %v168_v35 }
 0x10f   : > { %v396_v36 = vpop.f32.mrf.mxu0 }
 0x111   : > { %v398_v37 = vpop.f32.mrf.mxu0 }
 0x112   : > { %v405_v38 = vcombine.low %v396_v36, %v398_v37 }
 0x113   : > { %v400_v39 = vpop.f32.mrf.mxu0 }
 0x114   : > { %407 = vst [vmem:[%s163_s21] sm:$0xff] %v405_v38 }
 0x115   : > { %v401_v40 = vpop.f32.mrf.mxu0 }
 0x116 PF: > { %s12_s9 = sadd.s32 1, %s586_s9  }
 0x117   : > { %p9_p4 = scmp.ge.s32.totalorder %s12_s9, 4  }
 0x119   :  { %11 = sbr.rel (!%p9_p4) target bundleno = 1 (0x1), region = 61 }

</bundles_post_ra>
